<compile_context>
chip_gen: v7x
topology: tpu7x:2x2x1
jax: 0.10.0
libtpu: 0.0.40
codegen_flags: <defaults>
</compile_context>

<pallas_src>
import functools

import numpy as np
import jax
import jax.numpy as jnp
from jax.experimental import pallas as pl
from jax.experimental.pallas import tpu as pltpu


# ----------------------------- interpolation matrices (host-side glue) -----------------------

_INTERP_CACHE = {}


def _interp_matrix(in_size, out_size, mode, align_corners):
    """(out_size, in_size) row-stochastic matrix M with up(v) = M @ v along one spatial axis,
    matching PyTorch nn.Upsample semantics (legacy 'nearest', not 'nearest-exact')."""
    M = np.zeros((out_size, in_size), dtype=np.float32)
    if mode == "nearest":
        idx = np.floor(np.arange(out_size) * (in_size / out_size)).astype(np.int64)
        idx = np.clip(idx, 0, in_size - 1)
        M[np.arange(out_size), idx] = 1.0
        return M
    # bilinear (linear per axis)
    if align_corners:
        if out_size == 1:
            src = np.zeros((out_size,), dtype=np.float64)
        else:
            src = np.arange(out_size, dtype=np.float64) * (in_size - 1) / (out_size - 1)
    else:
        src = (np.arange(out_size, dtype=np.float64) + 0.5) * (in_size / out_size) - 0.5
        src = np.maximum(src, 0.0)  # PyTorch clamps negative source coords to 0
    i0 = np.clip(np.floor(src).astype(np.int64), 0, in_size - 1)
    i1 = np.minimum(i0 + 1, in_size - 1)
    frac = (src - i0).astype(np.float32)
    for o in range(out_size):
        M[o, i0[o]] += 1.0 - frac[o]
        M[o, i1[o]] += frac[o]
    return M


def _cached_interp(in_size, out_size, mode, align_corners):
    key = (in_size, out_size, mode, align_corners)
    m = _INTERP_CACHE.get(key)
    if m is None:
        m = _interp_matrix(in_size, out_size, mode, align_corners)
        _INTERP_CACHE[key] = m
    return m


def _upsample_cfg(upsample_mode, H, W):
    # 0: scale 2, bilinear, ac=False   1: scale 2, bilinear, ac=True   2: scale 2, nearest
    # 3: (256,256), bilinear, ac=False 4: (256,256), bilinear, ac=True 5: (256,256), nearest
    if upsample_mode in (0, 1, 2):
        Ho, Wo = int(H * 2), int(W * 2)
    else:
        Ho, Wo = 256, 256
    mode = "nearest" if upsample_mode in (2, 5) else "bilinear"
    align_corners = upsample_mode in (1, 4)
    return Ho, Wo, mode, align_corners


# ------------------------------------- tiling helpers ----------------------------------------

def _round_up(v, m):
    return -(-v // m) * m


def _vmem_profile():
    """(output-tile budget, vmem_limit cap, prefer >=2 even chunks) per TPU generation."""
    try:
        kind = jax.devices()[0].device_kind.lower()
    except Exception:
        kind = ""
    if any(tag in kind for tag in ("v4", "v5", "v6")):
        # 128 MiB physical VMEM, single TensorCore: big tiles, fewer grid steps.
        return 12 << 20, 64 << 20, False
    # v7x (64 MiB VMEM, 2 TCs) and unknown: conservative tiles, even chunk count for megacore.
    return 4 << 20, 32 << 20, True


def _pick_co(Cout, Ho, Wo, budget_bytes, prefer_multi_chunk):
    """Output-channel chunk co: divides Cout, co % 8 == 0 (or co == Cout) so the (co, Ho*Wo)
    block obeys the (8,128) rule, and the output tile fits the budget.  On the small-VMEM path
    prefer the largest co that still leaves an even number (>=2) of chunks (v7x megacore)."""
    hw_bytes = Ho * Wo * 4
    cands = sorted({c for c in range(8, Cout + 1, 8) if Cout % c == 0} | {Cout})
    fits = [c for c in cands if c * hw_bytes <= budget_bytes]
    if not fits:
        return cands[0]          # smallest legal chunk; budget fallback (review concern)
    if prefer_multi_chunk:
        even = [c for c in fits if (Cout // c) >= 2 and (Cout // c) % 2 == 0]
        if even:
            return max(even)
    return max(fits)


# ------------------------------------- Pallas kernel -----------------------------------------

def _expand_kernel(u_ref, w_ref, o_ref):
    # u_ref: (1, Kp, Ho*Wo) upsampled input for one batch element: rows 0..Cin-1 are the
    #                       upsampled channels, row Cin is all-ones (bias carrier), rest zero.
    # w_ref: (co, Kp)       chunk of [conv weight | bias | 0-pad].
    # o_ref: (1, co, Ho*Wo) output chunk == (co, Ho, Wo) slab of NCHW, stored flat & lane-dense.
    o_ref[0] = jnp.dot(w_ref[...], u_ref[0],
                       preferred_element_type=jnp.float32).astype(o_ref.dtype)


@functools.partial(jax.jit, static_argnames=("upsample_mode",))
def tiny_model_forward(x, weight, bias, upsample_mode):
    """x: (N, Cin, H, W) f32; weight: (Cout, Cin, 1, 1); bias: (Cout,)."""
    N, Cin, H, W = x.shape
    Cout = weight.shape[0]
    Ho, Wo, mode, align_corners = _upsample_cfg(upsample_mode, H, W)
    HWo = Ho * Wo

    My_np = _cached_interp(H, Ho, mode, align_corners)     # (Ho, H)
    Mx_np = _cached_interp(W, Wo, mode, align_corners)     # (Wo, W)
    # Conv/upsample reorder + bias passthrough are exact ONLY because interpolation rows sum
    # to 1 (true for PyTorch bilinear and legacy nearest).  Guard against future modes.
    assert np.allclose(My_np.sum(axis=1), 1.0, atol=1e-6)
    assert np.allclose(Mx_np.sum(axis=1), 1.0, atol=1e-6)
    My = jnp.asarray(My_np)
    Mx = jnp.asarray(Mx_np)

    # Separable upsample of the Cin=3 INPUT channels (tiny vs the 192-channel output).
    xf = x.astype(jnp.float32)
    u = jnp.einsum("rh,nchw,qw->ncrq", My, xf, Mx)          # (N, Cin, Ho, Wo)
    u_flat = u.reshape(N, Cin, HWo)                          # free (contiguous) view

    # Pad the contraction dim to a full sublane group (8) and fold the bias into the padding
    # via a ones row, so the kernel is a single aligned MXU dot.
    Kp = _round_up(Cin + 1, 8)
    u_pad = jnp.zeros((N, Kp, HWo), jnp.float32)
    u_pad = u_pad.at[:, :Cin, :].set(u_flat)
    u_pad = u_pad.at[:, Cin, :].set(1.0)                     # bias carrier row

    w2p = jnp.zeros((Cout, Kp), jnp.float32)
    w2p = w2p.at[:, :Cin].set(weight.reshape(Cout, Cin).astype(jnp.float32))
    w2p = w2p.at[:, Cin].set(bias.astype(jnp.float32))

    budget, vmem_cap, prefer_multi = _vmem_profile()
    co = _pick_co(Cout, Ho, Wo, budget, prefer_multi)
    n_oc = Cout // co

    # Right-size the VMEM request from the real padded, double-buffered tiles (+1 output-sized
    # temporary for the dot result before the store), capped per generation.
    o_blk = _round_up(co, 8) * _round_up(HWo, 128) * 4
    u_blk = Kp * _round_up(HWo, 128) * 4
    w_blk = _round_up(co, 8) * _round_up(Kp, 128) * 4
    vmem_need = 2 * (o_blk + u_blk + w_blk) + o_blk + (2 << 20)
    vmem_limit = int(min(vmem_cap, max(8 << 20, vmem_need)))

    out3 = pl.pallas_call(
        _expand_kernel,
        out_shape=jax.ShapeDtypeStruct((N, Cout, HWo), jnp.float32),
        grid_spec=pltpu.PrefetchScalarGridSpec(
            num_scalar_prefetch=0,
            grid=(N, n_oc),   # Upad[n] rides the OUTER axis -> VMEM-resident across the oc sweep
            in_specs=[
                pl.BlockSpec((1, Kp, HWo), lambda n, oc: (n, 0, 0)),
                pl.BlockSpec((co, Kp), lambda n, oc: (oc, 0)),
            ],
            out_specs=pl.BlockSpec((1, co, HWo), lambda n, oc: (n, oc, 0)),
        ),
        compiler_params=pltpu.CompilerParams(
            dimension_semantics=("parallel", "parallel"),
            vmem_limit_bytes=vmem_limit,
        ),
    )(u_pad, w2p)

    # (N, Cout, Ho*Wo) and (N, Cout, Ho, Wo) are the same row-major buffer: free reshape.
    return out3.reshape(N, Cout, Ho, Wo)


# ------------------------------------- plain-JAX reference -----------------------------------

def tiny_model_ref(x, weight, bias, upsample_mode):
    """Conv-then-upsample, exactly the PyTorch op order (validates the reordering/bias fold)."""
    N, Cin, H, W = x.shape
    Cout = weight.shape[0]
    Ho, Wo, mode, align_corners = _upsample_cfg(upsample_mode, H, W)
    My = jnp.asarray(_cached_interp(H, Ho, mode, align_corners))
    Mx = jnp.asarray(_cached_interp(W, Wo, mode, align_corners))
    y = jnp.einsum("oc,nchw->nohw", weight.reshape(Cout, Cin).astype(jnp.float32),
                   x.astype(jnp.float32)) + bias.reshape(1, Cout, 1, 1)
    return jnp.einsum("ph,nchw,qw->ncpq", My, y, Mx)


# ------------------------------------------- main ---------------------------------------------

if __name__ == "__main__":
    key = jax.random.PRNGKey(0)
    kx, kw, kb = jax.random.split(key, 3)

    N, Cin, H, W = 2, 3, 16, 16
    Cout = 192

    x = jax.random.normal(kx, (N, Cin, H, W), dtype=jnp.float32)
    weight = jax.random.normal(kw, (Cout, Cin, 1, 1), dtype=jnp.float32) * 0.1
    bias = jax.random.normal(kb, (Cout,), dtype=jnp.float32) * 0.1

    # All six nn.Upsample configurations of the original module.
    for mode in range(6):
        out = jax.block_until_ready(tiny_model_forward(x, weight, bias, upsample_mode=mode))
        Ho, Wo, _, _ = _upsample_cfg(mode, H, W)
        assert out.shape == (N, Cout, Ho, Wo), out.shape
        ref = jax.block_until_ready(tiny_model_ref(x, weight, bias, mode))
        np.testing.assert_allclose(np.asarray(out), np.asarray(ref), rtol=1e-4, atol=1e-4)

    print("KERNEL_OK")
</pallas_src>

<mosaic_0001>
module attributes {stable_mosaic.version = 11 : i64} {
  func.func @_expand_kernel(%arg0: i32, %arg1: i32, %arg2: memref<1x8x1024xf32, #tpu.memory_space<vmem>>, %arg3: memref<96x8xf32, #tpu.memory_space<vmem>>, %arg4: memref<1x96x1024xf32, #tpu.memory_space<vmem>>) attributes {dimension_semantics = [#tpu.dimension_semantics<parallel>, #tpu.dimension_semantics<parallel>], iteration_bounds = array<i64: 2, 2>, scalar_prefetch = 0 : i64, scratch_operands = 0 : i64, tpu.core_type = #tpu.core_type<tc>, window_params = [{transform_indices = @transform_0, window_bounds = array<i64: 1, 8, 1024>}, {transform_indices = @transform_1, window_bounds = array<i64: 96, 8>}, {transform_indices = @transform_2, window_bounds = array<i64: 1, 96, 1024>}]} {
    %c0 = arith.constant 0 : index
    %c0_0 = arith.constant 0 : index
    %0 = vector.load %arg3[%c0, %c0_0] : memref<96x8xf32, #tpu.memory_space<vmem>>, vector<96x8xf32>
    %c0_1 = arith.constant 0 : index
    %c0_2 = arith.constant 0 : index
    %c0_3 = arith.constant 0 : index
    %1 = vector.load %arg2[%c0_1, %c0_2, %c0_3] : memref<1x8x1024xf32, #tpu.memory_space<vmem>>, vector<1x8x1024xf32>
    %2 = vector.shape_cast %1 : vector<1x8x1024xf32> to vector<8x1024xf32>
    %cst = arith.constant dense<0.000000e+00> : vector<96x1024xf32>
    %3 = tpu.matmul %0, %2, %cst {dimension_numbers = #tpu.dot_dimension_numbers<[1], [0], [0], [1], [0, 0, 1, 1], [], []>} : vector<96x8xf32>, vector<8x1024xf32>, vector<96x1024xf32> -> vector<96x1024xf32>
    %c0_4 = arith.constant 0 : index
    %c0_5 = arith.constant 0 : index
    %c0_6 = arith.constant 0 : index
    %4 = vector.load %arg4[%c0_4, %c0_5, %c0_6] : memref<1x96x1024xf32, #tpu.memory_space<vmem>>, vector<1x96x1024xf32>
    %5 = vector.shape_cast %4 : vector<1x96x1024xf32> to vector<96x1024xf32>
    %6 = vector.shape_cast %3 : vector<96x1024xf32> to vector<1x96x1024xf32>
    tpu.vector_store %arg4[%c0_4, %c0_5, %c0_6], %6 {strides = array<i32>} : memref<1x96x1024xf32, #tpu.memory_space<vmem>>, vector<1x96x1024xf32>,
    return
  }
  func.func @transform_0(%arg0: i32, %arg1: i32) -> (i32, i32, i32) {
    %c0_i32 = arith.constant 0 : i32
    %c0_i32_0 = arith.constant 0 : i32
    %c0_i32_1 = arith.constant 0 : i32
    return %arg0, %c0_i32, %c0_i32_0 : i32, i32, i32
  }
  func.func @transform_1(%arg0: i32, %arg1: i32) -> (i32, i32) {
    %c0_i32 = arith.constant 0 : i32
    %c0_i32_0 = arith.constant 0 : i32
    return %arg1, %c0_i32 : i32, i32
  }
  func.func @transform_2(%arg0: i32, %arg1: i32) -> (i32, i32, i32) {
    %c0_i32 = arith.constant 0 : i32
    %c0_i32_0 = arith.constant 0 : i32
    return %arg0, %arg1, %c0_i32 : i32, i32, i32
  }
}

</mosaic_0001>

<bundles_post_ra>
// kernel: tiny_model_forward.1
= control target key start
LH: loop header
LB: loop body
LE: loop exit
PB: predicated region body
PF: predicated region fallthrough
CT: control target
= control target key end

     0   :  { %s1153_s9 = smov 0   ;;  %s1155_s10 = smov 0   ;;  %s1424_s0 = inlined_call_operand.vmem [shape: f32[2,8,1024], index: 0, kind: input, shape index: {}]   ;;  %s1425_s1 = inlined_call_operand.vmem [shape: f32[192,8], index: 1, kind: input, shape index: {}]   ;;  %s1426_s2 = inlined_call_operand.vmem [shape: f32[2,192,1024], index: 2, kind: output, shape index: {}]  }
   0x1   :  { %s1157_s11 = smov 0   ;;  %s1159_s12 = smov 0  }
   0x2   :  { %s1161_s13 = smov 0  }
   0x3 LB: > { %s21_s14 = sadd.s32 1, %s1127_s11  ;;  %s24_s15 = sadd.s32 1, %s1131_s12  ;;  %s1135_s13 = sphi %s1161_s13, %s12_s13   ;;  %s1131_s12 = sphi %s1159_s12, %s1430_s12   ;;  %s1127_s11 = sphi %s1157_s11, %s1429_s11   ;;  %s1123_s10 = sphi %s1155_s10, %s1428_s10   ;;  %s1119_s9 = sphi %s1153_s9, %s1427_s9  }
   0x4   : > { %p22_p0 = scmp.ge.s32.totalorder %s21_s14, 2  ;;  %p998_p1 = scmp.ge.s32.totalorder %s1135_s13, 1 }
   0x5   : > { %p137_p2 = scmp.lt.s32.totalorder %s1135_s13, 5 }
   0x6   : > { %s1432_s14 = smov (%p22_p0, %s21_s14), 0  ;;  %s1434_s15 = smov (!%p22_p0, %s24_s15), %s1131_s12 }
   0x7   : > { %p138_p3 = pnand %p998_p1, %p137_p2  ;;  %p26_p4 = scmp.ge.s32.totalorder %s1434_s15, 2 }
   0x8   : > { %p169_p5 = scmp.lt.s32.totalorder (!%p138_p3), %s1123_s10, 1  ;;  %s174_s16 = smul.u32 (!%p138_p3), 12, %s1119_s9  ;;  %v1137_v0 = vmov (!%p138_p3), 0.0   ;;  %vm211_vm0 = vcmask (!%p138_p3), 64512  }
   0x9   : > { %s1436_s15 = smov (%p26_p4, %s1434_s15), 0  ;;  %141 = sbr.rel (%p138_p3) target bundleno = 329 (0x149), region = 28 }
   0xa   : > { %312 = vmatprep.mubr.f32.mxu0 (!%p138_p3), %v1137_v0  ;;  %449 = vmatprep.mubr.f32.mxu1 (!%p138_p3), %v1137_v0  ;;  %p175_p6 = scmp.lt.s32.totalorder (!%p138_p3), %s174_s16, 23 }
  0x10   : > { %s1438_s10 = smov (!%p169_p5, %s1123_s10), 1  ;;  %s1440_s16 = smov (!%p175_p6, %s174_s16), 23 }
  0x11   : > { %s1054_s17 = sshll.u32 %s1438_s10, 6  ;;  %s1055_s21 = smul.u32 192, %s1438_s10 }
  0x12   : > { %s173_s20 = scalar_lea.vmem %s1424_s0, %s1054_s17  ;;  %s1001_s22 = sshll.u32 %s1440_s16, 3 }
  0x13   : > { %v204_v1 = vld [vmem:[%s173_s20 + $0x8] sm:$0xff]  ;;  %v206_v2 = vld [vmem:[%s173_s20 + $0x18] sm:$0xff]  ;;  %v203_v3 = vld [vmem:[%s173_s20] sm:$0xff]  ;;  %s1191_s25 = scalar_lea.vmem %s1425_s1, %s1001_s22  ;;  %s1193_s26 = sadd.s32 %s1055_s21, %s1001_s22 }
  0x14   : > { %248 = vmatprep.subr.mxu0 %v204_v1  ;;  %385 = vmatprep.subr.mxu1 %v206_v2  ;;  %v205_v4 = vld [vmem:[%s173_s20 + $0x10] sm:$0xff]  ;;  %v208_v5 = vld [vmem:[%s173_s20 + $0x28] sm:$0xff]  ;;  %v210_v6 = vld [vmem:[%s173_s20 + $0x38] sm:$0xff]  ;;  %s1003_s27 = sshll.u32 %s1193_s26, 3 }
  0x15   : > { %249 = vmatpush1.msra.mxu0 %v203_v3  ;;  %386 = vmatpush1.msra.mxu1 %v205_v4  ;;  %v207_v7 = vld [vmem:[%s173_s20 + $0x20] sm:$0xff]  ;;  %v209_v8 = vld [vmem:[%s173_s20 + $0x30] sm:$0xff]  ;;  %v192_v10 = vld [vmem:[%s1191_s25 + $0x8] sm:$0xff]  ;;  %s1311_s30 = scalar_lea.vmem %s1426_s2, %s1003_s27 }
  0x16   : > { %522 = vmatprep.subr.mxu0 %v208_v5  ;;  %659 = vmatprep.subr.mxu1 %v210_v6  ;;  %v1196_v9 = vld [vmem:[%s1191_s25] sm:$0xff]  ;;  %v193_v11 = vld [vmem:[%s1191_s25 + $0x10] sm:$0xff]  ;;  %v194_v12 = vld [vmem:[%s1191_s25 + $0x18] sm:$0xff] }
  0x17   : > { %1004 = vmatmul.mubr.msk.f32.vlgmr.msra.gmra.mrb[0].mxu0 %vm211_vm0, %v1196_v9  ;;  %1016 = vmatmul.mubr.msk.f32.vlgmr.msra.gmra.mrb[0].mxu1 %vm211_vm0, %v1196_v9  ;;  %v195_v13 = vld [vmem:[%s1191_s25 + $0x20] sm:$0xff]  ;;  %v196_v14 = vld [vmem:[%s1191_s25 + $0x28] sm:$0xff]  ;;  %v197_v15 = vld [vmem:[%s1191_s25 + $0x30] sm:$0xff] }
  0x18   : > { %523 = vmatpush1.msra.mxu0 %v207_v7  ;;  %660 = vmatpush1.msra.mxu1 %v209_v8  ;;  %v198_v16 = vld [vmem:[%s1191_s25 + $0x38] sm:$0xff]  ;;  %v199_v17 = vld [vmem:[%s1191_s25 + $0x40] sm:$0xff]  ;;  %v200_v18 = vld [vmem:[%s1191_s25 + $0x48] sm:$0xff] }
  0x19   : > { %318 = vmatprep.mubr.f32.mxu0 %v1137_v0  ;;  %455 = vmatprep.mubr.f32.mxu1 %v1137_v0  ;;  %v201_v19 = vld [vmem:[%s1191_s25 + $0x50] sm:$0xff]  ;;  %v202_v20 = vld [vmem:[%s1191_s25 + $0x58] sm:$0xff] }
  0x1b   : > { %1005 = vmatmul.mubr.msk.f32.gmra.mrb[2].mxu0 %vm211_vm0, %v192_v10  ;;  %1017 = vmatmul.mubr.msk.f32.gmra.mrb[2].mxu1 %vm211_vm0, %v192_v10 }
  0x1c   : > { %324 = vmatprep.mubr.f32.mxu0 %v1137_v0  ;;  %461 = vmatprep.mubr.f32.mxu1 %v1137_v0 }
  0x1f   : > { %1006 = vmatmul.mubr.msk.f32.gmra.mrb[4].mxu0 %vm211_vm0, %v193_v11  ;;  %1018 = vmatmul.mubr.msk.f32.gmra.mrb[4].mxu1 %vm211_vm0, %v193_v11 }
  0x20   : > { %330 = vmatprep.mubr.f32.mxu0 %v1137_v0  ;;  %467 = vmatprep.mubr.f32.mxu1 %v1137_v0 }
  0x23   : > { %1007 = vmatmul.mubr.msk.f32.gmra.mrb[6].mxu0 %vm211_vm0, %v194_v12  ;;  %1019 = vmatmul.mubr.msk.f32.gmra.mrb[6].mxu1 %vm211_vm0, %v194_v12 }
  0x24   : > { %336 = vmatprep.mubr.f32.mxu0 %v1137_v0  ;;  %473 = vmatprep.mubr.f32.mxu1 %v1137_v0 }
  0x27   : > { %1008 = vmatmul.mubr.msk.f32.gmra.mrb[8].mxu0 %vm211_vm0, %v195_v13  ;;  %1020 = vmatmul.mubr.msk.f32.gmra.mrb[8].mxu1 %vm211_vm0, %v195_v13 }
  0x28   : > { %342 = vmatprep.mubr.f32.mxu0 %v1137_v0  ;;  %479 = vmatprep.mubr.f32.mxu1 %v1137_v0 }
  0x2b   : > { %1009 = vmatmul.mubr.msk.f32.gmra.mrb[10].mxu0 %vm211_vm0, %v196_v14  ;;  %1021 = vmatmul.mubr.msk.f32.gmra.mrb[10].mxu1 %vm211_vm0, %v196_v14 }
  0x2c   : > { %348 = vmatprep.mubr.f32.mxu0 %v1137_v0  ;;  %485 = vmatprep.mubr.f32.mxu1 %v1137_v0 }
  0x2f   : > { %1010 = vmatmul.mubr.msk.f32.gmra.mrb[12].mxu0 %vm211_vm0, %v197_v15  ;;  %1022 = vmatmul.mubr.msk.f32.gmra.mrb[12].mxu1 %vm211_vm0, %v197_v15 }
  0x30   : > { %354 = vmatprep.mubr.f32.mxu0 %v1137_v0  ;;  %491 = vmatprep.mubr.f32.mxu1 %v1137_v0 }
  0x33   : > { %1011 = vmatmul.mubr.msk.f32.gmra.mrb[14].mxu0 %vm211_vm0, %v198_v16  ;;  %1023 = vmatmul.mubr.msk.f32.gmra.mrb[14].mxu1 %vm211_vm0, %v198_v16 }
  0x34   : > { %360 = vmatprep.mubr.f32.mxu0 %v1137_v0  ;;  %497 = vmatprep.mubr.f32.mxu1 %v1137_v0 }
  0x37   : > { %1012 = vmatmul.mubr.msk.f32.gmra.mrb[16].mxu0 %vm211_vm0, %v199_v17  ;;  %1024 = vmatmul.mubr.msk.f32.gmra.mrb[16].mxu1 %vm211_vm0, %v199_v17 }
  0x38   : > { %366 = vmatprep.mubr.f32.mxu0 %v1137_v0  ;;  %503 = vmatprep.mubr.f32.mxu1 %v1137_v0 }
  0x3b   : > { %1013 = vmatmul.mubr.msk.f32.gmra.mrb[18].mxu0 %vm211_vm0, %v200_v18  ;;  %1025 = vmatmul.mubr.msk.f32.gmra.mrb[18].mxu1 %vm211_vm0, %v200_v18 }
  0x3c   : > { %372 = vmatprep.mubr.f32.mxu0 %v1137_v0  ;;  %509 = vmatprep.mubr.f32.mxu1 %v1137_v0 }
  0x3f   : > { %1014 = vmatmul.mubr.msk.f32.gmra.mrb[20].mxu0 %vm211_vm0, %v201_v19  ;;  %1026 = vmatmul.mubr.msk.f32.gmra.mrb[20].mxu1 %vm211_vm0, %v201_v19 }
  0x40   : > { %378 = vmatprep.mubr.f32.mxu0 %v1137_v0  ;;  %515 = vmatprep.mubr.f32.mxu1 %v1137_v0 }
  0x43   : > { %1015 = vmatmul.mubr.msk.f32.gmra.mrb[22].mxu0 %vm211_vm0, %v202_v20  ;;  %1027 = vmatmul.mubr.msk.f32.gmra.mrb[22].mxu1 %vm211_vm0, %v202_v20 }
  0x44   : > { %586 = vmatprep.mubr.f32.mxu0 %v1137_v0  ;;  %723 = vmatprep.mubr.f32.mxu1 %v1137_v0 }
  0x47   : > { %1028 = vmatmul.mubr.msk.f32.vlgmr.msra.gmra.mrb[24].mxu0 %vm211_vm0, %v1196_v9  ;;  %1040 = vmatmul.mubr.msk.f32.vlgmr.msra.gmra.mrb[24].mxu1 %vm211_vm0, %v1196_v9 }
  0x48   : > { %592 = vmatprep.mubr.f32.mxu0 %v1137_v0  ;;  %729 = vmatprep.mubr.f32.mxu1 %v1137_v0 }
  0x4b   : > { %1029 = vmatmul.mubr.msk.f32.gmra.mrb[26].mxu0 %vm211_vm0, %v192_v10  ;;  %1041 = vmatmul.mubr.msk.f32.gmra.mrb[26].mxu1 %vm211_vm0, %v192_v10 }
  0x4c   : > { %598 = vmatprep.mubr.f32.mxu0 %v1137_v0  ;;  %735 = vmatprep.mubr.f32.mxu1 %v1137_v0 }
  0x4f   : > { %1030 = vmatmul.mubr.msk.f32.gmra.mrb[28].mxu0 %vm211_vm0, %v193_v11  ;;  %1042 = vmatmul.mubr.msk.f32.gmra.mrb[28].mxu1 %vm211_vm0, %v193_v11 }
  0x50   : > { %604 = vmatprep.mubr.f32.mxu0 %v1137_v0  ;;  %741 = vmatprep.mubr.f32.mxu1 %v1137_v0 }
  0x53   : > { %1031 = vmatmul.mubr.msk.f32.gmra.mrb[30].mxu0 %vm211_vm0, %v194_v12  ;;  %1043 = vmatmul.mubr.msk.f32.gmra.mrb[30].mxu1 %vm211_vm0, %v194_v12 }
  0x54   : > { %610 = vmatprep.mubr.f32.mxu0 %v1137_v0  ;;  %747 = vmatprep.mubr.f32.mxu1 %v1137_v0 }
  0x57   : > { %1032 = vmatmul.mubr.msk.f32.gmra.mrb[32].mxu0 %vm211_vm0, %v195_v13  ;;  %1044 = vmatmul.mubr.msk.f32.gmra.mrb[32].mxu1 %vm211_vm0, %v195_v13 }
  0x58   : > { %616 = vmatprep.mubr.f32.mxu0 %v1137_v0  ;;  %753 = vmatprep.mubr.f32.mxu1 %v1137_v0 }
  0x5b   : > { %1033 = vmatmul.mubr.msk.f32.gmra.mrb[34].mxu0 %vm211_vm0, %v196_v14  ;;  %1045 = vmatmul.mubr.msk.f32.gmra.mrb[34].mxu1 %vm211_vm0, %v196_v14 }
  0x5c   : > { %622 = vmatprep.mubr.f32.mxu0 %v1137_v0  ;;  %759 = vmatprep.mubr.f32.mxu1 %v1137_v0 }
  0x5f   : > { %1034 = vmatmul.mubr.msk.f32.gmra.mrb[36].mxu0 %vm211_vm0, %v197_v15  ;;  %1046 = vmatmul.mubr.msk.f32.gmra.mrb[36].mxu1 %vm211_vm0, %v197_v15 }
  0x60   : > { %628 = vmatprep.mubr.f32.mxu0 %v1137_v0  ;;  %765 = vmatprep.mubr.f32.mxu1 %v1137_v0 }
  0x63   : > { %1035 = vmatmul.mubr.msk.f32.gmra.mrb[38].mxu0 %vm211_vm0, %v198_v16  ;;  %1047 = vmatmul.mubr.msk.f32.gmra.mrb[38].mxu1 %vm211_vm0, %v198_v16 }
  0x64   : > { %634 = vmatprep.mubr.f32.mxu0 %v1137_v0  ;;  %771 = vmatprep.mubr.f32.mxu1 %v1137_v0 }
  0x67   : > { %1036 = vmatmul.mubr.msk.f32.gmra.mrb[40].mxu0 %vm211_vm0, %v199_v17  ;;  %1048 = vmatmul.mubr.msk.f32.gmra.mrb[40].mxu1 %vm211_vm0, %v199_v17 }
  0x68   : > { %640 = vmatprep.mubr.f32.mxu0 %v1137_v0  ;;  %777 = vmatprep.mubr.f32.mxu1 %v1137_v0 }
  0x6b   : > { %1037 = vmatmul.mubr.msk.f32.gmra.mrb[42].mxu0 %vm211_vm0, %v200_v18  ;;  %1049 = vmatmul.mubr.msk.f32.gmra.mrb[42].mxu1 %vm211_vm0, %v200_v18 }
  0x6c   : > { %646 = vmatprep.mubr.f32.mxu0 %v1137_v0  ;;  %783 = vmatprep.mubr.f32.mxu1 %v1137_v0 }
  0x6f   : > { %1038 = vmatmul.mubr.msk.f32.gmra.mrb[44].mxu0 %vm211_vm0, %v201_v19  ;;  %1050 = vmatmul.mubr.msk.f32.gmra.mrb[44].mxu1 %vm211_vm0, %v201_v19 }
  0x70   : > { %652 = vmatprep.mubr.f32.mxu0 %v1137_v0  ;;  %789 = vmatprep.mubr.f32.mxu1 %v1137_v0 }
  0x73   : > { %1039 = vmatmul.mubr.msk.f32.gmra.mrb[46].mxu0 %vm211_vm0, %v202_v20  ;;  %1051 = vmatmul.mubr.msk.f32.gmra.mrb[46].mxu1 %vm211_vm0, %v202_v20 }
  0xea   : > { %v314_v21 = vpop.f32.mrb[0].mxu0  ;;  %v451_v22 = vpop.f32.mrb[0].mxu1 }
  0xeb   : > { %796 = vst [vmem:[%s1311_s30] sm:$0xff] %v314_v21  ;;  %798 = vst [vmem:[%s1311_s30 + $0x10] sm:$0xff] %v451_v22  ;;  %v316_v23 = vpop.f32.mrb[1].mxu0  ;;  %v453_v24 = vpop.f32.mrb[1].mxu1 }
  0xec   : > { %797 = vst [vmem:[%s1311_s30 + $0x8] sm:$0xff] %v316_v23  ;;  %799 = vst [vmem:[%s1311_s30 + $0x18] sm:$0xff] %v453_v24 }
  0xee   : > { %v320_v25 = vpop.f32.mrb[2].mxu0  ;;  %v457_v26 = vpop.f32.mrb[2].mxu1 }
  0xef   : > { %804 = vst [vmem:[%s1311_s30 + $0x40] sm:$0xff] %v320_v25  ;;  %806 = vst [vmem:[%s1311_s30 + $0x50] sm:$0xff] %v457_v26  ;;  %v322_v27 = vpop.f32.mrb[3].mxu0  ;;  %v459_v28 = vpop.f32.mrb[3].mxu1 }
  0xf0   : > { %805 = vst [vmem:[%s1311_s30 + $0x48] sm:$0xff] %v322_v27  ;;  %807 = vst [vmem:[%s1311_s30 + $0x58] sm:$0xff] %v459_v28 }
  0xf2   : > { %v326_v29 = vpop.f32.mrb[4].mxu0  ;;  %v463_v30 = vpop.f32.mrb[4].mxu1 }
  0xf3   : > { %812 = vst [vmem:[%s1311_s30 + $0x80] sm:$0xff] %v326_v29  ;;  %814 = vst [vmem:[%s1311_s30 + $0x90] sm:$0xff] %v463_v30  ;;  %v328_v31 = vpop.f32.mrb[5].mxu0  ;;  %v465_v32 = vpop.f32.mrb[5].mxu1 }
  0xf4   : > { %813 = vst [vmem:[%s1311_s30 + $0x88] sm:$0xff] %v328_v31  ;;  %815 = vst [vmem:[%s1311_s30 + $0x98] sm:$0xff] %v465_v32 }
  0xf6   : > { %v332_v33 = vpop.f32.mrb[6].mxu0  ;;  %v469_v34 = vpop.f32.mrb[6].mxu1 }
  0xf7   : > { %820 = vst [vmem:[%s1311_s30 + $0xc0] sm:$0xff] %v332_v33  ;;  %822 = vst [vmem:[%s1311_s30 + $0xd0] sm:$0xff] %v469_v34  ;;  %v334_v35 = vpop.f32.mrb[7].mxu0  ;;  %v471_v36 = vpop.f32.mrb[7].mxu1 }
  0xf8   : > { %821 = vst [vmem:[%s1311_s30 + $0xc8] sm:$0xff] %v334_v35  ;;  %823 = vst [vmem:[%s1311_s30 + $0xd8] sm:$0xff] %v471_v36 }
  0xfa   : > { %v338_v37 = vpop.f32.mrb[8].mxu0  ;;  %v475_v38 = vpop.f32.mrb[8].mxu1 }
  0xfb   : > { %828 = vst [vmem:[%s1311_s30 + $0x100] sm:$0xff] %v338_v37  ;;  %830 = vst [vmem:[%s1311_s30 + $0x110] sm:$0xff] %v475_v38  ;;  %v340_v39 = vpop.f32.mrb[9].mxu0  ;;  %v477_v40 = vpop.f32.mrb[9].mxu1 }
  0xfc   : > { %829 = vst [vmem:[%s1311_s30 + $0x108] sm:$0xff] %v340_v39  ;;  %831 = vst [vmem:[%s1311_s30 + $0x118] sm:$0xff] %v477_v40 }
  0xfe   : > { %v344_v41 = vpop.f32.mrb[10].mxu0  ;;  %v481_v42 = vpop.f32.mrb[10].mxu1 }
  0xff   : > { %836 = vst [vmem:[%s1311_s30 + $0x140] sm:$0xff] %v344_v41  ;;  %838 = vst [vmem:[%s1311_s30 + $0x150] sm:$0xff] %v481_v42  ;;  %v346_v43 = vpop.f32.mrb[11].mxu0  ;;  %v483_v44 = vpop.f32.mrb[11].mxu1 }
 0x100   : > { %837 = vst [vmem:[%s1311_s30 + $0x148] sm:$0xff] %v346_v43  ;;  %839 = vst [vmem:[%s1311_s30 + $0x158] sm:$0xff] %v483_v44 }
 0x102   : > { %v350_v45 = vpop.f32.mrb[12].mxu0  ;;  %v487_v46 = vpop.f32.mrb[12].mxu1 }
 0x103   : > { %844 = vst [vmem:[%s1311_s30 + $0x180] sm:$0xff] %v350_v45  ;;  %846 = vst [vmem:[%s1311_s30 + $0x190] sm:$0xff] %v487_v46  ;;  %v352_v47 = vpop.f32.mrb[13].mxu0  ;;  %v489_v48 = vpop.f32.mrb[13].mxu1 }
 0x104   : > { %845 = vst [vmem:[%s1311_s30 + $0x188] sm:$0xff] %v352_v47  ;;  %847 = vst [vmem:[%s1311_s30 + $0x198] sm:$0xff] %v489_v48 }
 0x106   : > { %v356_v49 = vpop.f32.mrb[14].mxu0  ;;  %v493_v50 = vpop.f32.mrb[14].mxu1 }
 0x107   : > { %852 = vst [vmem:[%s1311_s30 + $0x1c0] sm:$0xff] %v356_v49  ;;  %854 = vst [vmem:[%s1311_s30 + $0x1d0] sm:$0xff] %v493_v50  ;;  %v358_v51 = vpop.f32.mrb[15].mxu0  ;;  %v495_v52 = vpop.f32.mrb[15].mxu1 }
 0x108   : > { %853 = vst [vmem:[%s1311_s30 + $0x1c8] sm:$0xff] %v358_v51  ;;  %855 = vst [vmem:[%s1311_s30 + $0x1d8] sm:$0xff] %v495_v52 }
 0x10a   : > { %v362_v53 = vpop.f32.mrb[16].mxu0  ;;  %v499_v54 = vpop.f32.mrb[16].mxu1 }
 0x10b   : > { %860 = vst [vmem:[%s1311_s30 + $0x200] sm:$0xff] %v362_v53  ;;  %862 = vst [vmem:[%s1311_s30 + $0x210] sm:$0xff] %v499_v54  ;;  %v364_v55 = vpop.f32.mrb[17].mxu0  ;;  %v501_v56 = vpop.f32.mrb[17].mxu1 }
 0x10c   : > { %861 = vst [vmem:[%s1311_s30 + $0x208] sm:$0xff] %v364_v55  ;;  %863 = vst [vmem:[%s1311_s30 + $0x218] sm:$0xff] %v501_v56 }
 0x10e   : > { %v368_v57 = vpop.f32.mrb[18].mxu0  ;;  %v505_v58 = vpop.f32.mrb[18].mxu1 }
 0x10f   : > { %868 = vst [vmem:[%s1311_s30 + $0x240] sm:$0xff] %v368_v57  ;;  %870 = vst [vmem:[%s1311_s30 + $0x250] sm:$0xff] %v505_v58  ;;  %v370_v59 = vpop.f32.mrb[19].mxu0  ;;  %v507_v60 = vpop.f32.mrb[19].mxu1 }
 0x110   : > { %869 = vst [vmem:[%s1311_s30 + $0x248] sm:$0xff] %v370_v59  ;;  %871 = vst [vmem:[%s1311_s30 + $0x258] sm:$0xff] %v507_v60 }
 0x112   : > { %v374_v61 = vpop.f32.mrb[20].mxu0  ;;  %v511_v62 = vpop.f32.mrb[20].mxu1 }
 0x113   : > { %876 = vst [vmem:[%s1311_s30 + $0x280] sm:$0xff] %v374_v61  ;;  %878 = vst [vmem:[%s1311_s30 + $0x290] sm:$0xff] %v511_v62  ;;  %v376_v63 = vpop.f32.mrb[21].mxu0  ;;  %v513_v0 = vpop.f32.mrb[21].mxu1 }
 0x114   : > { %877 = vst [vmem:[%s1311_s30 + $0x288] sm:$0xff] %v376_v63  ;;  %879 = vst [vmem:[%s1311_s30 + $0x298] sm:$0xff] %v513_v0 }
 0x116   : > { %v380_v1 = vpop.f32.mrb[22].mxu0  ;;  %v517_v2 = vpop.f32.mrb[22].mxu1 }
 0x117   : > { %884 = vst [vmem:[%s1311_s30 + $0x2c0] sm:$0xff] %v380_v1  ;;  %886 = vst [vmem:[%s1311_s30 + $0x2d0] sm:$0xff] %v517_v2  ;;  %v382_v3 = vpop.f32.mrb[23].mxu0  ;;  %v519_v4 = vpop.f32.mrb[23].mxu1 }
 0x118   : > { %885 = vst [vmem:[%s1311_s30 + $0x2c8] sm:$0xff] %v382_v3  ;;  %887 = vst [vmem:[%s1311_s30 + $0x2d8] sm:$0xff] %v519_v4 }
 0x11a   : > { %v588_v5 = vpop.f32.mrb[24].mxu0  ;;  %v725_v6 = vpop.f32.mrb[24].mxu1 }
 0x11b   : > { %800 = vst [vmem:[%s1311_s30 + $0x20] sm:$0xff] %v588_v5  ;;  %802 = vst [vmem:[%s1311_s30 + $0x30] sm:$0xff] %v725_v6  ;;  %v590_v7 = vpop.f32.mrb[25].mxu0  ;;  %v727_v8 = vpop.f32.mrb[25].mxu1 }
 0x11c   : > { %801 = vst [vmem:[%s1311_s30 + $0x28] sm:$0xff] %v590_v7  ;;  %803 = vst [vmem:[%s1311_s30 + $0x38] sm:$0xff] %v727_v8 }
 0x11e   : > { %v594_v9 = vpop.f32.mrb[26].mxu0  ;;  %v731_v10 = vpop.f32.mrb[26].mxu1 }
 0x11f   : > { %808 = vst [vmem:[%s1311_s30 + $0x60] sm:$0xff] %v594_v9  ;;  %810 = vst [vmem:[%s1311_s30 + $0x70] sm:$0xff] %v731_v10  ;;  %v596_v11 = vpop.f32.mrb[27].mxu0  ;;  %v733_v12 = vpop.f32.mrb[27].mxu1 }
 0x120   : > { %809 = vst [vmem:[%s1311_s30 + $0x68] sm:$0xff] %v596_v11  ;;  %811 = vst [vmem:[%s1311_s30 + $0x78] sm:$0xff] %v733_v12 }
 0x122   : > { %v600_v13 = vpop.f32.mrb[28].mxu0  ;;  %v737_v14 = vpop.f32.mrb[28].mxu1 }
 0x123   : > { %816 = vst [vmem:[%s1311_s30 + $0xa0] sm:$0xff] %v600_v13  ;;  %818 = vst [vmem:[%s1311_s30 + $0xb0] sm:$0xff] %v737_v14  ;;  %v602_v15 = vpop.f32.mrb[29].mxu0  ;;  %v739_v16 = vpop.f32.mrb[29].mxu1 }
 0x124   : > { %817 = vst [vmem:[%s1311_s30 + $0xa8] sm:$0xff] %v602_v15  ;;  %819 = vst [vmem:[%s1311_s30 + $0xb8] sm:$0xff] %v739_v16 }
 0x126   : > { %v606_v17 = vpop.f32.mrb[30].mxu0  ;;  %v743_v18 = vpop.f32.mrb[30].mxu1 }
 0x127   : > { %824 = vst [vmem:[%s1311_s30 + $0xe0] sm:$0xff] %v606_v17  ;;  %826 = vst [vmem:[%s1311_s30 + $0xf0] sm:$0xff] %v743_v18  ;;  %v608_v19 = vpop.f32.mrb[31].mxu0  ;;  %v745_v20 = vpop.f32.mrb[31].mxu1 }
 0x128   : > { %825 = vst [vmem:[%s1311_s30 + $0xe8] sm:$0xff] %v608_v19  ;;  %827 = vst [vmem:[%s1311_s30 + $0xf8] sm:$0xff] %v745_v20 }
 0x12a   : > { %v612_v21 = vpop.f32.mrb[32].mxu0  ;;  %v749_v22 = vpop.f32.mrb[32].mxu1 }
 0x12b   : > { %832 = vst [vmem:[%s1311_s30 + $0x120] sm:$0xff] %v612_v21  ;;  %834 = vst [vmem:[%s1311_s30 + $0x130] sm:$0xff] %v749_v22  ;;  %v614_v23 = vpop.f32.mrb[33].mxu0  ;;  %v751_v24 = vpop.f32.mrb[33].mxu1 }
 0x12c   : > { %833 = vst [vmem:[%s1311_s30 + $0x128] sm:$0xff] %v614_v23  ;;  %835 = vst [vmem:[%s1311_s30 + $0x138] sm:$0xff] %v751_v24 }
 0x12e   : > { %v618_v25 = vpop.f32.mrb[34].mxu0  ;;  %v755_v26 = vpop.f32.mrb[34].mxu1 }
 0x12f   : > { %840 = vst [vmem:[%s1311_s30 + $0x160] sm:$0xff] %v618_v25  ;;  %842 = vst [vmem:[%s1311_s30 + $0x170] sm:$0xff] %v755_v26  ;;  %v620_v27 = vpop.f32.mrb[35].mxu0  ;;  %v757_v28 = vpop.f32.mrb[35].mxu1 }
 0x130   : > { %841 = vst [vmem:[%s1311_s30 + $0x168] sm:$0xff] %v620_v27  ;;  %843 = vst [vmem:[%s1311_s30 + $0x178] sm:$0xff] %v757_v28 }
 0x132   : > { %v624_v29 = vpop.f32.mrb[36].mxu0  ;;  %v761_v30 = vpop.f32.mrb[36].mxu1 }
 0x133   : > { %848 = vst [vmem:[%s1311_s30 + $0x1a0] sm:$0xff] %v624_v29  ;;  %850 = vst [vmem:[%s1311_s30 + $0x1b0] sm:$0xff] %v761_v30  ;;  %v626_v31 = vpop.f32.mrb[37].mxu0  ;;  %v763_v32 = vpop.f32.mrb[37].mxu1 }
 0x134   : > { %849 = vst [vmem:[%s1311_s30 + $0x1a8] sm:$0xff] %v626_v31  ;;  %851 = vst [vmem:[%s1311_s30 + $0x1b8] sm:$0xff] %v763_v32 }
 0x136   : > { %v630_v33 = vpop.f32.mrb[38].mxu0  ;;  %v767_v34 = vpop.f32.mrb[38].mxu1 }
 0x137   : > { %856 = vst [vmem:[%s1311_s30 + $0x1e0] sm:$0xff] %v630_v33  ;;  %858 = vst [vmem:[%s1311_s30 + $0x1f0] sm:$0xff] %v767_v34  ;;  %v632_v35 = vpop.f32.mrb[39].mxu0  ;;  %v769_v36 = vpop.f32.mrb[39].mxu1 }
 0x138   : > { %857 = vst [vmem:[%s1311_s30 + $0x1e8] sm:$0xff] %v632_v35  ;;  %859 = vst [vmem:[%s1311_s30 + $0x1f8] sm:$0xff] %v769_v36 }
 0x13a   : > { %v636_v37 = vpop.f32.mrb[40].mxu0  ;;  %v773_v38 = vpop.f32.mrb[40].mxu1 }
 0x13b   : > { %864 = vst [vmem:[%s1311_s30 + $0x220] sm:$0xff] %v636_v37  ;;  %866 = vst [vmem:[%s1311_s30 + $0x230] sm:$0xff] %v773_v38  ;;  %v638_v39 = vpop.f32.mrb[41].mxu0  ;;  %v775_v40 = vpop.f32.mrb[41].mxu1 }
 0x13c   : > { %865 = vst [vmem:[%s1311_s30 + $0x228] sm:$0xff] %v638_v39  ;;  %867 = vst [vmem:[%s1311_s30 + $0x238] sm:$0xff] %v775_v40 }
 0x13e   : > { %v642_v41 = vpop.f32.mrb[42].mxu0  ;;  %v779_v42 = vpop.f32.mrb[42].mxu1 }
 0x13f   : > { %872 = vst [vmem:[%s1311_s30 + $0x260] sm:$0xff] %v642_v41  ;;  %874 = vst [vmem:[%s1311_s30 + $0x270] sm:$0xff] %v779_v42  ;;  %v644_v43 = vpop.f32.mrb[43].mxu0  ;;  %v781_v44 = vpop.f32.mrb[43].mxu1 }
 0x140   : > { %873 = vst [vmem:[%s1311_s30 + $0x268] sm:$0xff] %v644_v43  ;;  %875 = vst [vmem:[%s1311_s30 + $0x278] sm:$0xff] %v781_v44 }
 0x142   : > { %v648_v45 = vpop.f32.mrb[44].mxu0  ;;  %v785_v46 = vpop.f32.mrb[44].mxu1 }
 0x143   : > { %880 = vst [vmem:[%s1311_s30 + $0x2a0] sm:$0xff] %v648_v45  ;;  %882 = vst [vmem:[%s1311_s30 + $0x2b0] sm:$0xff] %v785_v46  ;;  %v650_v47 = vpop.f32.mrb[45].mxu0  ;;  %v787_v48 = vpop.f32.mrb[45].mxu1 }
 0x144   : > { %881 = vst [vmem:[%s1311_s30 + $0x2a8] sm:$0xff] %v650_v47  ;;  %883 = vst [vmem:[%s1311_s30 + $0x2b8] sm:$0xff] %v787_v48 }
 0x146   : > { %v654_v49 = vpop.f32.mrb[46].mxu0  ;;  %v791_v50 = vpop.f32.mrb[46].mxu1 }
 0x147   : > { %888 = vst [vmem:[%s1311_s30 + $0x2e0] sm:$0xff] %v654_v49  ;;  %890 = vst [vmem:[%s1311_s30 + $0x2f0] sm:$0xff] %v791_v50  ;;  %v656_v51 = vpop.f32.mrb[47].mxu0  ;;  %v793_v52 = vpop.f32.mrb[47].mxu1 }
 0x148   : > { %889 = vst [vmem:[%s1311_s30 + $0x2e8] sm:$0xff] %v656_v51  ;;  %891 = vst [vmem:[%s1311_s30 + $0x2f8] sm:$0xff] %v793_v52 }
 0x149 PF: > { %s12_s13 = sadd.s32 1, %s1135_s13   ;;  %s1427_s9 = smov %s1127_s11 }
 0x14a   : > { %p9_p7 = scmp.ge.s32.totalorder %s12_s13, 6   ;;  %s1428_s10 = smov %s1131_s12 }
 0x14b   : > { %s1429_s11 = smov %s1432_s14  ;;  %s1430_s12 = smov %s1436_s15 }
 0x14c   :  { %11 = sbr.rel (!%p9_p7) target bundleno = 3 (0x3), region = 61 }

</bundles_post_ra>
